<compile_context>
chip_gen: v6e
topology: v6e:2x2x1
jax: 0.10.0
libtpu: 0.0.40
codegen_flags: <defaults>
</compile_context>

<pallas_src>
import math

import jax
import jax.numpy as jnp
from jax.experimental import pallas as pl
from jax.experimental.pallas import tpu as pltpu


def _make_kernel(bs, k, tk, num_k, temperature, tau):
    n_pairs = bs * 2 - 2
    clamp_min = float(n_pairs) * math.e ** (-1.0 / temperature)
    inv_one_minus_tau = 1.0 / (1.0 - tau)
    pos_scale = -tau * float(n_pairs)
    needs_mask = (num_k > 1) and (k % tk != 0)
    j_chunk = min(bs, 1024)  # lane-chunk of the bs x bs finalize phase

    def kernel(pos_row_ref, neg_ref, loss_ref, acc_ref):
        kk = pl.program_id(0)

        @pl.when(kk == 0)
        def _init():
            acc_ref[...] = jnp.zeros_like(acc_ref)

        # ---- reduction phase: accumulate per-row sums of this neg k-tile.
        n = neg_ref[...].astype(jnp.float32)                        # (bs, tk)
        if needs_mask:
            col = jax.lax.broadcasted_iota(jnp.int32, (bs, tk), 1) + kk * tk
            n = jnp.where(col < k, n, 0.0)
        acc_ref[...] += jnp.sum(n, axis=-1, keepdims=True)          # (bs, 1)

        # ---- finalize: O(bs^2) log phase, once, on the last k tile.
        @pl.when(kk == num_k - 1)
        def _finalize():
            s_col = acc_ref[...]                                    # (bs, 1)
            p_row = pos_row_ref[...].astype(jnp.float32)            # (1, bs)
            log_p_row = jnp.log(p_row)                              # (1, bs)

            total = jnp.zeros((1, 1), jnp.float32)
            for c0 in range(0, bs, j_chunk):
                c1 = min(c0 + j_chunk, bs)
                p_c = p_row[:, c0:c1]                               # (1, C)
                # Transposed orientation of the torch (bs, bs) matrix:
                #   ng[a, b] = (-tau*N*pos[b] + neg_sum[a]) / (1 - tau)
                ng = (pos_scale * p_c + s_col) * inv_one_minus_tau  # (bs, C)
                ng = jnp.maximum(ng, clamp_min)
                # loss[a, b] = log(pos[b] + ng[a, b]) - log(pos[b])
                lpn = jnp.log(p_c + ng)                             # (bs, C)
                csum = jnp.sum(lpn, axis=-1, keepdims=True)         # (bs, 1)
                csum = jnp.sum(csum, axis=0, keepdims=True)         # (1, 1)
                lsum = jnp.sum(log_p_row[:, c0:c1], axis=-1,
                               keepdims=True)                       # (1, 1)
                total = total + csum - float(bs) * lsum
            loss_ref[...] = total * (1.0 / float(bs * bs))

    return kernel


def debiased_contrastive_head_loss(pos, neg, temperature=0.1, tau=0.1,
                                    tile_k=None):
    """Pallas implementation of DebiasedContrastiveHead.forward.

    Args:
      pos: (bs, 1) positive similarities (any float dtype).
      neg: (bs, k) negative similarities (any float dtype).
      tile_k: optional override of the k tile size (mainly for testing).
    Returns:
      dict with key 'loss' -> scalar float32 loss.
    """
    bs, one = pos.shape
    assert one == 1, "pos must be (N, 1)"
    nb, k = neg.shape
    assert nb == bs

    itemsize = jnp.dtype(neg.dtype).itemsize
    if tile_k is None:
        # Keep the double-buffered neg tile well under default scoped VMEM
        # on all of v5e / v6e / v7x.
        tile_budget_bytes = 8 * 1024 * 1024
        tile_k = max(128, ((tile_budget_bytes // (2 * bs * itemsize)) // 128) * 128)
    if k <= tile_k:
        tk, num_k = k, 1
    else:
        tk = max(128, (tile_k // 128) * 128)
        num_k = pl.cdiv(k, tk)

    kernel = _make_kernel(bs, k, tk, num_k, temperature, tau)

    # Layout plumbing only (tiny): present pos as a lane-dense (1, bs) row so
    # the kernel never needs a sublane<->lane move. Native dtype preserved.
    pos_row = pos.reshape(1, bs)

    loss = pl.pallas_call(
        kernel,
        out_shape=jax.ShapeDtypeStruct((1, 1), jnp.float32),
        grid_spec=pltpu.PrefetchScalarGridSpec(
            num_scalar_prefetch=0,
            grid=(num_k,),
            in_specs=[
                pl.BlockSpec((1, bs), lambda kk: (0, 0)),
                pl.BlockSpec((bs, tk), lambda kk: (0, kk)),
            ],
            out_specs=pl.BlockSpec((1, 1), lambda kk: (0, 0)),
            scratch_shapes=[pltpu.VMEM((bs, 1), jnp.float32)],
        ),
        compiler_params=pltpu.CompilerParams(
            dimension_semantics=("arbitrary",),
        ),
    )(pos_row, neg)

    return {"loss": loss[0, 0]}


def _reference(pos, neg, temperature=0.1, tau=0.1):
    """Pure-JAX reference reproducing the exact torch semantics."""
    pos = pos.astype(jnp.float32)
    neg = neg.astype(jnp.float32)
    bs = pos.shape[0]
    n_pairs = bs * 2 - 2
    ng = (-tau * n_pairs * pos + jnp.sum(neg, axis=-1)) / (1.0 - tau)  # (bs, bs)
    ng = jnp.maximum(ng, n_pairs * math.e ** (-1.0 / temperature))
    return jnp.mean(-jnp.log(pos / (pos + ng)))


if __name__ == "__main__":
    temperature = 0.1
    tau = 0.1
    key = jax.random.PRNGKey(0)
    k1, k2, k3, k4 = jax.random.split(key, 4)

    # Case 1: single-tile path (bs=8, k=128), float32.
    pos = jax.random.uniform(k1, (8, 1), minval=0.1, maxval=1.0, dtype=jnp.float32)
    neg = jax.random.uniform(k2, (8, 128), minval=0.1, maxval=1.0, dtype=jnp.float32)
    out = debiased_contrastive_head_loss(pos, neg, temperature, tau)
    loss_val = jax.block_until_ready(out["loss"])
    ref = jax.block_until_ready(_reference(pos, neg, temperature, tau))
    assert jnp.allclose(loss_val, ref, rtol=1e-4, atol=1e-5), (loss_val, ref)

    # Case 2: tiled k path with masked remainder (k=320, forced tile_k=128).
    pos2 = jax.random.uniform(k3, (16, 1), minval=0.1, maxval=1.0, dtype=jnp.float32)
    neg2 = jax.random.uniform(k4, (16, 320), minval=0.1, maxval=1.0, dtype=jnp.float32)
    out2 = debiased_contrastive_head_loss(pos2, neg2, temperature, tau, tile_k=128)
    loss2 = jax.block_until_ready(out2["loss"])
    ref2 = jax.block_until_ready(_reference(pos2, neg2, temperature, tau))
    assert jnp.allclose(loss2, ref2, rtol=1e-4, atol=1e-5), (loss2, ref2)

    # Case 3: bf16 inputs pass through in native dtype (in-kernel f32 cast).
    pos3 = pos.astype(jnp.bfloat16)
    neg3 = neg.astype(jnp.bfloat16)
    out3 = debiased_contrastive_head_loss(pos3, neg3, temperature, tau)
    loss3 = jax.block_until_ready(out3["loss"])
    ref3 = jax.block_until_ready(_reference(pos3, neg3, temperature, tau))
    assert jnp.allclose(loss3, ref3, rtol=1e-3, atol=1e-4), (loss3, ref3)

    print("KERNEL_OK")
</pallas_src>

<mosaic_0001>
module attributes {stable_mosaic.version = 11 : i64} {
  func.func @kernel(%arg0: i32, %arg1: memref<1x8xf32, #tpu.memory_space<vmem>>, %arg2: memref<8x128xf32, #tpu.memory_space<vmem>>, %arg3: memref<1x1xf32, #tpu.memory_space<vmem>>, %arg4: memref<8x1xf32, #tpu.memory_space<vmem>>) attributes {dimension_semantics = [#tpu.dimension_semantics<arbitrary>], iteration_bounds = array<i64: 1>, scalar_prefetch = 0 : i64, scratch_operands = 1 : i64, tpu.core_type = #tpu.core_type<tc>, window_params = [{pipeline_mode = #tpu.pipeline_mode<synchronous>, transform_indices = @transform_0, window_bounds = array<i64: 1, 8>}, {transform_indices = @transform_1, window_bounds = array<i64: 8, 128>}, {pipeline_mode = #tpu.pipeline_mode<synchronous>, transform_indices = @transform_2, window_bounds = array<i64: 1, 1>}]} {
    %c0_i32 = arith.constant 0 : i32
    %0 = arith.cmpi eq, %arg0, %c0_i32 : i32
    %1 = arith.extui %0 : i1 to i32
    %c0_i32_0 = arith.constant 0 : i32
    %2 = arith.cmpi ne, %1, %c0_i32_0 : i32
    scf.if %2 {
      %cst_8 = arith.constant 0.000000e+00 : f32
      %12 = vector.broadcast %cst_8 : f32 to vector<8x1xf32>
      %c0_9 = arith.constant 0 : index
      %c0_10 = arith.constant 0 : index
      %13 = vector.load %arg4[%c0_9, %c0_10] : memref<8x1xf32, #tpu.memory_space<vmem>>, vector<8x1xf32>
      tpu.vector_store %arg4[%c0_9, %c0_10], %12 {strides = array<i32>} : memref<8x1xf32, #tpu.memory_space<vmem>>, vector<8x1xf32>,
    } else {
    }
    %c0 = arith.constant 0 : index
    %c0_1 = arith.constant 0 : index
    %3 = vector.load %arg2[%c0, %c0_1] : memref<8x128xf32, #tpu.memory_space<vmem>>, vector<8x128xf32>
    %c0_2 = arith.constant 0 : index
    %c0_3 = arith.constant 0 : index
    %4 = vector.load %arg4[%c0_2, %c0_3] : memref<8x1xf32, #tpu.memory_space<vmem>>, vector<8x1xf32>
    %cst = arith.constant dense<0.000000e+00> : vector<8xf32>
    %5 = vector.multi_reduction <add>, %3, %cst [1] : vector<8x128xf32> to vector<8xf32>
    %6 = vector.shape_cast %5 : vector<8xf32> to vector<8x1xf32>
    %7 = arith.addf %4, %6 : vector<8x1xf32>
    %c0_4 = arith.constant 0 : index
    %c0_5 = arith.constant 0 : index
    %8 = vector.load %arg4[%c0_4, %c0_5] : memref<8x1xf32, #tpu.memory_space<vmem>>, vector<8x1xf32>
    tpu.vector_store %arg4[%c0_4, %c0_5], %7 {strides = array<i32>} : memref<8x1xf32, #tpu.memory_space<vmem>>, vector<8x1xf32>,
    %c0_i32_6 = arith.constant 0 : i32
    %9 = arith.cmpi eq, %arg0, %c0_i32_6 : i32
    %10 = arith.extui %9 : i1 to i32
    %c0_i32_7 = arith.constant 0 : i32
    %11 = arith.cmpi ne, %10, %c0_i32_7 : i32
    scf.if %11 {
      %c0_8 = arith.constant 0 : index
      %c0_9 = arith.constant 0 : index
      %12 = vector.load %arg4[%c0_8, %c0_9] : memref<8x1xf32, #tpu.memory_space<vmem>>, vector<8x1xf32>
      %c0_10 = arith.constant 0 : index
      %c0_11 = arith.constant 0 : index
      %13 = vector.load %arg1[%c0_10, %c0_11] : memref<1x8xf32, #tpu.memory_space<vmem>>, vector<1x8xf32>
      %14 = math.log %13 : vector<1x8xf32>
      %cst_12 = arith.constant 0.000000e+00 : f32
      %15 = vector.broadcast %cst_12 : f32 to vector<1x1xf32>
      %cst_13 = arith.constant -1.400000e+00 : f32
      %16 = vector.broadcast %cst_13 : f32 to vector<1x8xf32>
      %17 = arith.mulf %16, %13 : vector<1x8xf32>
      %18 = vector.broadcast %17 : vector<1x8xf32> to vector<8x8xf32>
      %19 = vector.broadcast %12 : vector<8x1xf32> to vector<8x8xf32>
      %20 = arith.addf %18, %19 : vector<8x8xf32>
      %cst_14 = arith.constant 1.11111116 : f32
      %21 = vector.broadcast %cst_14 : f32 to vector<8x8xf32>
      %22 = arith.mulf %20, %21 : vector<8x8xf32>
      %cst_15 = arith.constant 6.355990e-04 : f32
      %23 = vector.broadcast %cst_15 : f32 to vector<8x8xf32>
      %24 = arith.maximumf %22, %23 : vector<8x8xf32>
      %25 = vector.broadcast %13 : vector<1x8xf32> to vector<8x8xf32>
      %26 = arith.addf %25, %24 : vector<8x8xf32>
      %27 = math.log %26 : vector<8x8xf32>
      %cst_16 = arith.constant dense<0.000000e+00> : vector<8xf32>
      %28 = vector.multi_reduction <add>, %27, %cst_16 [1] : vector<8x8xf32> to vector<8xf32>
      %29 = vector.shape_cast %28 : vector<8xf32> to vector<8x1xf32>
      %cst_17 = arith.constant dense<0.000000e+00> : vector<1xf32>
      %30 = vector.multi_reduction <add>, %29, %cst_17 [0] : vector<8x1xf32> to vector<1xf32>
      %31 = vector.shape_cast %30 : vector<1xf32> to vector<1x1xf32>
      %cst_18 = arith.constant dense<0.000000e+00> : vector<1xf32>
      %32 = vector.multi_reduction <add>, %14, %cst_18 [1] : vector<1x8xf32> to vector<1xf32>
      %33 = vector.shape_cast %32 : vector<1xf32> to vector<1x1xf32>
      %34 = arith.addf %15, %31 : vector<1x1xf32>
      %cst_19 = arith.constant 8.000000e+00 : f32
      %35 = vector.broadcast %cst_19 : f32 to vector<1x1xf32>
      %36 = arith.mulf %35, %33 : vector<1x1xf32>
      %37 = arith.subf %34, %36 : vector<1x1xf32>
      %cst_20 = arith.constant 1.562500e-02 : f32
      %38 = vector.broadcast %cst_20 : f32 to vector<1x1xf32>
      %39 = arith.mulf %37, %38 : vector<1x1xf32>
      %c0_21 = arith.constant 0 : index
      %c0_22 = arith.constant 0 : index
      %40 = vector.load %arg3[%c0_21, %c0_22] : memref<1x1xf32, #tpu.memory_space<vmem>>, vector<1x1xf32>
      tpu.vector_store %arg3[%c0_21, %c0_22], %39 {strides = array<i32>} : memref<1x1xf32, #tpu.memory_space<vmem>>, vector<1x1xf32>,
    } else {
    }
    return
  }
  func.func @transform_0(%arg0: i32) -> (i32, i32) {
    %c0_i32 = arith.constant 0 : i32
    %c0_i32_0 = arith.constant 0 : i32
    %c0_i32_1 = arith.constant 0 : i32
    return %c0_i32, %c0_i32_0 : i32, i32
  }
  func.func @transform_1(%arg0: i32) -> (i32, i32) {
    %c0_i32 = arith.constant 0 : i32
    %c0_i32_0 = arith.constant 0 : i32
    return %c0_i32, %arg0 : i32, i32
  }
  func.func @transform_2(%arg0: i32) -> (i32, i32) {
    %c0_i32 = arith.constant 0 : i32
    %c0_i32_0 = arith.constant 0 : i32
    %c0_i32_1 = arith.constant 0 : i32
    return %c0_i32, %c0_i32_0 : i32, i32
  }
}

</mosaic_0001>

<bundles_post_ra>
// kernel: tpu_custom_call.1
= control target key start
LH: loop header
LB: loop body
LE: loop exit
PB: predicated region body
PF: predicated region fallthrough
CT: control target
= control target key end

     0   :  { %7 = vsyncpa [#allocation4], 0  ;;  %s221_s0 = inlined_call_operand.hbm [shape: f32[1,8], index: 0, kind: input, shape index: {}]   ;;  %s222_s1 = inlined_call_operand.hbm [shape: f32[8,128], index: 1, kind: input, shape index: {}]   ;;  %s223_s2 = inlined_call_operand.hbm [shape: f32[1,1], index: 2, kind: output, shape index: {}]  }
   0x1   :  { %8 = vsyncpa [#allocation7], 0 }
   0x2   :  { %9 = vsyncpa [#allocation5], 0  ;;  %s192_s9 = smov [#allocation3]   ;;  %s193_s11 = smov [#allocation6]  }
   0x3   :  { %s16_s10 = sshll.u32 %s192_s9, 4  ;;  %s26_s12 = sshll.u32 %s193_s11, 4  ;;  %s17_s10 = int_to_ptr.vmem [resolvable:$true] %s16_s10  ;;  %s27_s12 = int_to_ptr.vmem [resolvable:$true] %s26_s12 }
   0x4   :  { %s134_s13 = scalar_lea.vmem %s17_s10, 16  ;;  %s138_s14 = scalar_lea.vmem %s17_s10, 32 }
   0x5   :  { %p135_p0 = scmp.ne.s32.totalorder %s17_s10, %s134_s13  ;;  %p139_p1 = scmp.lt.s32.totalorder %s17_s10, %s17_s10 }
   0x6   :  { %p140_p2 = scmp.lt.s32.totalorder %s138_s14, %s134_s13 }
   0x8   :  { %p141_p3 = por %p140_p2, %p139_p1 }
   0xa   :  { %p142_p4 = pnand %p141_p3, %p135_p0 }
   0xc   :  { %145 = shalt.err (!%p142_p4)
}
   0xd   :  { %19 = dma.hbm_to_vmem [thread:$0]  %s221_s0, 16, %s17_s10, [#allocation4]  }
   0xe   :  { %s154_s17 = scalar_lea.vmem %s27_s12, 128  ;;  %p159_p6 = scmp.lt.s32.totalorder %s27_s12, %s27_s12 }
   0xf   :  { %p155_p5 = scmp.ne.s32.totalorder %s27_s12, %s154_s17  ;;  %p160_p7 = scmp.lt.s32.totalorder %s154_s17, %s154_s17 }
  0x11   :  { %p161_p8 = por %p160_p7, %p159_p6 }
  0x13   :  { %p162_p9 = pnand %p161_p8, %p155_p5 }
  0x15   :  { %165 = shalt.err (!%p162_p9)
}
  0x16   :  { %29 = dma.hbm_to_vmem [thread:$0]  %s222_s1, 128, %s27_s12, [#allocation7]  }
  0x17   :  { %186 = dma.done.wait [#allocation4], 16  }
  0x18   :  { %187 = vsyncadd [#allocation4], 4294967280 }
  0x19   :  { %188 = dma.done.wait [#allocation7], 128  }
  0x1a   :  { %189 = vsyncadd [#allocation7], 4294967168  ;;  %vm40_vm0 = vcmask 7168   ;;  %v194_v0 = vmov 0.0   ;;  %v42_v1 = vld [vmem:[#allocation6] sm:$0xff]  ;;  %v195_v2 = vmov 0   ;;  %v58_v7 = vlaneseq }
  0x1b   :  { %41 = vst.msk [vmem:[#allocation2] sm:$0xff] %vm40_vm0, %v194_v0  ;;  %44 = vadd.xlane.f32.xlu0 %v42_v1  ;;  %v53_v9 = vld [vmem:[#allocation3] sm:$0x1]  ;;  %vm80_vm1 = vcmask 64512   ;;  %vm90_vm2 = vcmask 57344   ;;  %s196_s0 = smov [#allocation8]  }
  0x1c   :  { %121 = vset.pattern.permute.xlu0 %v195_v2  ;;  %v59_v8 = vshrl.u32 %v58_v7, 7  ;;  %v56_v10 = vmul.f32 -1.4, %v53_v9  ;;  %122 = vlog2.f32 %v53_v9  ;;  %s106_s1 = sshll.u32 %s196_s0, 4  ;;  %vm98_vm3 = vcmask 0   ;;  %s107_s1 = int_to_ptr.vmem [resolvable:$true] %s106_s1 }
  0x1d   :  { %s166_s20 = scalar_lea.vmem %s107_s1, 16  ;;  %s170_s21 = scalar_lea.vmem %s107_s1, 32 }
  0x1e   :  { %v60_v11 = vsub.s32 0, %v59_v8  ;;  %p167_p10 = scmp.ne.s32.totalorder %s107_s1, %s166_s20  ;;  %p171_p11 = scmp.lt.s32.totalorder %s107_s1, %s107_s1 }
  0x1f   :  { %p172_p12 = scmp.lt.s32.totalorder %s170_s21, %s166_s20 }
  0x20   :  { %v61_v12 = vrot.slane %v56_v10, %v60_v11  ;;  %v75_v15 = vrot.slane %v53_v9, %v60_v11 }
  0x21   :  { %p173_p13 = por %p172_p12, %p171_p11 }
  0x22   :  { %v43_v3 = vld [vmem:[#allocation2] sm:$0xff] }
  0x23   :  { %p174_p0 = pnand %p173_p13, %p167_p10 }
  0x29   :  { %v123_v19 = vpop.eup %122 }
  0x2a   :  { %v55_v22 = vmul.f32 0.6931472, %v123_v19 }
  0x2c   :  { %v91_v24 = vsel %vm90_vm2, %v55_v22, 0.0 }
  0xa4   :  { %v45_v4 = vpop.xlane.xlu0 %44 }
  0xa5   :  { %v46_v5 = vadd.f32 %v45_v4, %v43_v3 }
  0xa7   :  { %48 = vst.msk [vmem:[#allocation2] sm:$0xff] %vm40_vm0, %v46_v5 }
  0xae   :  { %v52_v6 = vld [vmem:[#allocation2] sm:$0xff] }
  0xaf   :  { %65 = vperm.xlu0 %121, %v52_v6  }
 0x12a   :  { %v66_v13 = vpop.permute.xlu0 %65 }
 0x12b   :  { %v68_v14 = vadd.f32 %v66_v13, %v61_v12 }
 0x12d   :  { %v69_v16 = vmul.f32 1.1111112, %v68_v14 }
 0x12f   :  { %v70_v17 = vmax.f32 %v69_v16, 0.000635599 }
 0x131   :  { %v77_v18 = vadd.f32 %v75_v15, %v70_v17 }
 0x133   :  { %124 = vlog2.f32 %v77_v18 }
 0x140   :  { %v125_v20 = vpop.eup %124 }
 0x141   :  { %v79_v21 = vmul.f32 0.6931472, %v125_v20 }
 0x143   :  { %v81_v23 = vsel %vm80_vm1, %v79_v21, 0.0 }
 0x144   :  { %82 = vadd.xlane.f32.xlu1 %v81_v23 }
 0x148   :  { %92 = vadd.xlane.f32.xlu1 %v91_v24 }
 0x1cd   :  { %v83_v25 = vpop.xlane.xlu1 %82 }
 0x1ce   :  { %v84_v26 = vrot.slane %v83_v25, 4 }
 0x1d0   :  { %v85_v27 = vadd.f32 %v84_v26, %v83_v25 }
 0x1d1   :  { %v93_v29 = vpop.xlane.xlu1 %92 }
 0x1d2   :  { %v86_v28 = vrot.slane %v85_v27, 2  ;;  %v95_v32 = vmul.f32 8.0, %v93_v29 }
 0x1d4   :  { %v87_v30 = vadd.f32 %v86_v28, %v85_v27 }
 0x1d6   :  { %v88_v31 = vrot.slane %v87_v30, 1 }
 0x1d8   :  { %v89_v33 = vadd.f32 %v88_v31, %v87_v30 }
 0x1da   :  { %v96_v34 = vsub.f32 %v89_v33, %v95_v32 }
 0x1dc   :  { %v97_v35 = vmul.f32 0.015625, %v96_v34 }
 0x1de   :  { %99 = vst.msk [vmem:[#allocation8] sm:$0x1] %vm98_vm3, %v97_v35 }
 0x1df   :  { %177 = shalt.err (!%p174_p0)
}
 0x1e0   :  { %109 = dma.vmem_to_hbm [thread:$0]  %s107_s1, 16, %s223_s2, [#allocation5]  }
 0x1e1   :  { %190 = dma.done.wait [#allocation5], 16  }
 0x1e2   :  { %191 = vsyncadd [#allocation5], 4294967280 }
 0x1e3   :  { %113 = vsyncpa [#allocation4], 1 }
 0x1e4   :  { %114 = vsyncpa [#allocation7], 1 }
 0x1e5   :  { %115 = vsyncpa [#allocation5], 1 }

</bundles_post_ra>
